<compile_context>
chip_gen: v5e
topology: v5e:2x2
jax: 0.10.0
libtpu: 0.0.40
codegen_flags: <defaults>
</compile_context>

<pallas_src>
import functools

import jax
import jax.numpy as jnp
from jax.experimental import pallas as pl
from jax.experimental.pallas import tpu as pltpu


def _round_up(x, m):
    return (x + m - 1) // m * m


def cnn_kernel(x_ref, cw_ref, cb_ref, fcw_ref, fcb_ref, out_ref, pooled_ref,
               *, TL, L, FS):
    # x_ref     : [S_pad, TB, E]  bf16  embedded tokens (seq-major, resident per batch tile)
    # cw_ref    : [FS, E, F_pad]  bf16  conv weight, one [E, F_pad] matrix per tap
    # cb_ref    : [1, F_pad]      f32   conv bias (zero-padded)
    # fcw_ref   : [F_pad, O_pad]  bf16  fc weight (zero-padded)
    # fcb_ref   : [1, O_pad]      f32   fc bias (zero-padded)
    # out_ref   : [TB, O_pad]     f32   logits tile
    # pooled_ref: [TB, F_pad]     f32   running max of RAW conv scores (scratch)
    l = pl.program_id(1)
    last_l = pl.num_programs(1) - 1
    TB = out_ref.shape[0]
    F_pad = cw_ref.shape[2]
    E = x_ref.shape[2]

    @pl.when(l == 0)
    def _():
        # Raw (pre-bias, pre-ReLU) scores are accumulated, so the identity for
        # the running max is -inf, not 0.
        pooled_ref[...] = jnp.full(pooled_ref.shape, -jnp.inf, pooled_ref.dtype)

    off = pl.multiple_of(l * TL, TL)

    # Conv as FS accumulated matmuls over shifted sequence slices (no im2col,
    # no zeros-init pass: the first tap's matmul initializes the accumulator).
    acc = None
    for t in range(FS):                                   # FS is small & static
        xs = x_ref[pl.ds(off + t, TL)]                    # [TL, TB, E]
        xs2 = xs.reshape(TL * TB, E)                      # layout-preserving (TB % 16 == 0)
        d = jnp.dot(xs2, cw_ref[t], preferred_element_type=jnp.float32)
        acc = d if acc is None else acc + d
    acc = acc.reshape(TL, TB, F_pad)

    # Fold this tile's positions into the running max of raw scores.
    def fold(vals):
        pooled_ref[...] = jnp.maximum(pooled_ref[...], jnp.max(vals, axis=0))

    if L % TL == 0:
        # No tail -> no masking on any grid step (static decision).
        fold(acc)
    else:
        @pl.when(l != last_l)
        def _():
            fold(acc)

        @pl.when(l == last_l)
        def _():
            # Only the last position tile can contain invalid positions.
            pos = off + jax.lax.broadcasted_iota(jnp.int32, (TL, 1, 1), 0)
            fold(jnp.where(pos < L, acc, -jnp.inf))

    @pl.when(l == last_l)
    def _():
        # Bias + ReLU hoisted here: max_l ReLU(x_l + b) == ReLU(max_l x_l + b).
        # TODO(synk): training-mode dropout (stochastic mask) not implemented;
        # eval semantics (identity) used.
        pooled = jnp.maximum(pooled_ref[...] + cb_ref[...], 0.0)
        logits = jnp.dot(pooled.astype(jnp.bfloat16), fcw_ref[...],
                         preferred_element_type=jnp.float32)
        out_ref[...] = (logits + fcb_ref[...]).astype(out_ref.dtype)


def cnn_forward(text, params, *, interpret=False):
    """text: int32 [seq_len, batch] -> logits [batch, output_dim] (f32)."""
    emb_table = params["embedding"]          # [vocab, E]
    conv_w = params["conv_w"]                # [F, 1, FS, E]   (torch layout)
    conv_b = params["conv_b"]                # [F]
    fc_w = params["fc_w"]                    # [O, F]          (torch layout)
    fc_b = params["fc_b"]                    # [O]

    F = conv_w.shape[0]
    FS = conv_w.shape[2]
    E = conv_w.shape[3]
    O = fc_w.shape[0]

    S, B = text.shape
    L = S - FS + 1
    assert L >= 1, "sequence shorter than filter size"

    F_pad = _round_up(F, 128)                # lane-dense filters
    O_pad = _round_up(O, 128)                # lane-dense logits (unmasked stores)

    # ---- tile selection with an explicit VMEM budget (fits v5e/v6e/v7x) ----
    TB = min(64, _round_up(max(B, 16), 16))  # bf16 packs 16 sublanes/vreg
    TL = min(256, _round_up(L, 8))           # conv-position tile, multiple of 8
    budget = 36 * 1024 * 1024                # keep well under v7x's 64 MiB VMEM

    def footprint(tb, tl):
        nl = (L + tl - 1) // tl
        s_pad = nl * tl + FS - 1
        x_blk = 2 * s_pad * tb * E * 2                      # bf16, double-buffered
        w_blk = 2 * (FS * E * F_pad * 2 + F_pad * 4
                     + F_pad * O_pad * 2 + O_pad * 4)       # weights/biases
        o_blk = 2 * tb * O_pad * 4                          # logits tile
        scratch = tb * F_pad * 4                            # pooled running max
        tmp = tl * tb * F_pad * 4                           # in-kernel f32 acc
        return x_blk + w_blk + o_blk + scratch + tmp

    while footprint(TB, TL) > budget and TB > 16:
        TB //= 2
    while footprint(TB, TL) > budget and TL > 64:
        TL //= 2

    B_pad = _round_up(B, TB)
    nL = (L + TL - 1) // TL
    S_pad = nL * TL + FS - 1                 # every in-kernel slice stays in bounds

    # Embedding lookup (XLA gather); keep seq-major [S, B, E] layout, cast bf16.
    embedded = jnp.take(emb_table, text, axis=0).astype(jnp.bfloat16)
    embedded = jnp.pad(embedded, ((0, S_pad - S), (0, B_pad - B), (0, 0)))

    # Conv weight [F,1,FS,E] -> per-tap [FS, E, F_pad]; zero-pad filters.
    cw = jnp.transpose(conv_w.reshape(F, FS, E), (1, 2, 0))
    cw = jnp.pad(cw, ((0, 0), (0, 0), (0, F_pad - F))).astype(jnp.bfloat16)
    cb = jnp.pad(conv_b, (0, F_pad - F)).reshape(1, F_pad).astype(jnp.float32)

    # FC weight [O, F] -> [F_pad, O_pad]; zero-pad so padded channels add nothing.
    fcw = jnp.pad(fc_w.T, ((0, F_pad - F), (0, O_pad - O))).astype(jnp.bfloat16)
    fcb = jnp.pad(fc_b, (0, O_pad - O)).reshape(1, O_pad).astype(jnp.float32)

    kernel = functools.partial(cnn_kernel, TL=TL, L=L, FS=FS)

    vmem_limit = int(min(max(footprint(TB, TL) + 8 * 1024 * 1024,
                             32 * 1024 * 1024),
                         48 * 1024 * 1024))

    out = pl.pallas_call(
        kernel,
        out_shape=jax.ShapeDtypeStruct((B_pad, O_pad), jnp.float32),
        grid_spec=pltpu.PrefetchScalarGridSpec(
            num_scalar_prefetch=0,
            grid=(B_pad // TB, nL),
            in_specs=[
                # full padded sequence for the current batch tile; same block
                # across the l axis -> loaded once per batch tile.
                pl.BlockSpec((S_pad, TB, E), lambda b, l: (0, b, 0)),
                pl.BlockSpec((FS, E, F_pad), lambda b, l: (0, 0, 0)),
                pl.BlockSpec((1, F_pad), lambda b, l: (0, 0)),
                pl.BlockSpec((F_pad, O_pad), lambda b, l: (0, 0)),
                pl.BlockSpec((1, O_pad), lambda b, l: (0, 0)),
            ],
            out_specs=pl.BlockSpec((TB, O_pad), lambda b, l: (b, 0)),
            scratch_shapes=[pltpu.VMEM((TB, F_pad), jnp.float32)],
        ),
        compiler_params=pltpu.CompilerParams(
            dimension_semantics=("parallel", "arbitrary"),
            vmem_limit_bytes=vmem_limit,
        ),
        interpret=interpret,
    )(embedded, cw, cb, fcw, fcb)

    return out[:B, :O]


def cnn_reference(text, params):
    """Pure-JAX reference (f32) matching the PyTorch forward semantics."""
    emb = jnp.take(params["embedding"], text.T, axis=0)          # [B, S, E]
    F = params["conv_w"].shape[0]
    FS = params["conv_w"].shape[2]
    E = params["conv_w"].shape[3]
    B, S, _ = emb.shape
    L = S - FS + 1
    w = params["conv_w"].reshape(F, FS * E)                      # [F, FS*E]
    windows = jnp.stack([emb[:, i:i + FS, :].reshape(B, FS * E)
                         for i in range(L)], axis=1)             # [B, L, FS*E]
    conved = jnp.einsum("blk,fk->blf", windows, w) + params["conv_b"]
    pooled = jnp.max(jnp.maximum(conved, 0.0), axis=1)           # [B, F]
    return pooled @ params["fc_w"].T + params["fc_b"]


def init_params(key, vocab_size, embedding_dim, n_filters, filter_sizes,
                output_dim, pad_idx):
    k_emb, k_cw, k_cb, k_fw, k_fb = jax.random.split(key, 5)
    embedding = jax.random.normal(k_emb, (vocab_size, embedding_dim),
                                  dtype=jnp.float32)
    embedding = embedding.at[pad_idx].set(0.0)

    fan_in_conv = 1 * filter_sizes * embedding_dim
    bound_c = 1.0 / jnp.sqrt(fan_in_conv)
    conv_w = jax.random.uniform(k_cw, (n_filters, 1, filter_sizes, embedding_dim),
                                minval=-bound_c, maxval=bound_c, dtype=jnp.float32)
    conv_b = jax.random.uniform(k_cb, (n_filters,),
                                minval=-bound_c, maxval=bound_c, dtype=jnp.float32)

    bound_f = 1.0 / jnp.sqrt(n_filters)
    fc_w = jax.random.uniform(k_fw, (output_dim, n_filters),
                              minval=-bound_f, maxval=bound_f, dtype=jnp.float32)
    fc_b = jax.random.uniform(k_fb, (output_dim,),
                              minval=-bound_f, maxval=bound_f, dtype=jnp.float32)
    return {
        "embedding": embedding,
        "conv_w": conv_w,
        "conv_b": conv_b,
        "fc_w": fc_w,
        "fc_b": fc_b,
    }


if __name__ == "__main__":
    # Small config consistent with the module's __init__.
    vocab_size = 50
    embedding_dim = 32
    n_filters = 16
    filter_sizes = 3
    output_dim = 4
    dropout = 0.5        # eval mode -> identity
    pad_idx = 1

    seq_len = 8
    batch = 2

    key = jax.random.PRNGKey(0)
    k_params, k_text = jax.random.split(key)
    params = init_params(k_params, vocab_size, embedding_dim, n_filters,
                         filter_sizes, output_dim, pad_idx)

    # text: [seq_len, batch] integer token ids (PyTorch convention)
    text = jax.random.randint(k_text, (seq_len, batch), 0, vocab_size,
                              dtype=jnp.int32)

    out = cnn_forward(text, params)
    jax.block_until_ready(out)

    assert out.shape == (batch, output_dim), out.shape

    ref = cnn_reference(text, params)
    assert jnp.allclose(out, ref, rtol=2e-2, atol=2e-2), (
        float(jnp.max(jnp.abs(out - ref))))

    print("KERNEL_OK")
</pallas_src>

<mosaic_0001>
module attributes {stable_mosaic.version = 11 : i64} {
  func.func @cnn_kernel(%arg0: i32, %arg1: i32, %arg2: memref<10x16x32xbf16, #tpu.memory_space<vmem>>, %arg3: memref<3x32x128xbf16, #tpu.memory_space<vmem>>, %arg4: memref<1x128xf32, #tpu.memory_space<vmem>>, %arg5: memref<128x128xbf16, #tpu.memory_space<vmem>>, %arg6: memref<1x128xf32, #tpu.memory_space<vmem>>, %arg7: memref<16x128xf32, #tpu.memory_space<vmem>>, %arg8: memref<16x128xf32, #tpu.memory_space<vmem>>) attributes {dimension_semantics = [#tpu.dimension_semantics<parallel>, #tpu.dimension_semantics<arbitrary>], iteration_bounds = array<i64: 1, 1>, scalar_prefetch = 0 : i64, scratch_operands = 1 : i64, tpu.core_type = #tpu.core_type<tc>, window_params = [{transform_indices = @transform_0, window_bounds = array<i64: 10, 16, 32>}, {pipeline_mode = #tpu.pipeline_mode<synchronous>, transform_indices = @transform_1, window_bounds = array<i64: 3, 32, 128>}, {pipeline_mode = #tpu.pipeline_mode<synchronous>, transform_indices = @transform_2, window_bounds = array<i64: 1, 128>}, {pipeline_mode = #tpu.pipeline_mode<synchronous>, transform_indices = @transform_3, window_bounds = array<i64: 128, 128>}, {pipeline_mode = #tpu.pipeline_mode<synchronous>, transform_indices = @transform_4, window_bounds = array<i64: 1, 128>}, {transform_indices = @transform_5, window_bounds = array<i64: 16, 128>}]} {
    %c0_i32 = arith.constant 0 : i32
    %0 = arith.cmpi eq, %arg1, %c0_i32 : i32
    %1 = arith.extui %0 : i1 to i32
    %c0_i32_0 = arith.constant 0 : i32
    %2 = arith.cmpi ne, %1, %c0_i32_0 : i32
    scf.if %2 {
      %cst_22 = arith.constant 0xFF800000 : f32
      %38 = vector.broadcast %cst_22 : f32 to vector<16x128xf32>
      %c0_23 = arith.constant 0 : index
      %c0_24 = arith.constant 0 : index
      %39 = vector.load %arg8[%c0_23, %c0_24] : memref<16x128xf32, #tpu.memory_space<vmem>>, vector<16x128xf32>
      tpu.vector_store %arg8[%c0_23, %c0_24], %38 {strides = array<i32>} : memref<16x128xf32, #tpu.memory_space<vmem>>, vector<16x128xf32>,
    } else {
    }
    %c8_i32 = arith.constant 8 : i32
    %3 = arith.muli %arg1, %c8_i32 : i32
    %4 = tpu.assume_multiple %3, 8 : i32
    %c0_i32_1 = arith.constant 0 : i32
    %5 = arith.addi %4, %c0_i32_1 : i32
    %6 = arith.index_cast %5 : i32 to index
    %c0 = arith.constant 0 : index
    %c0_2 = arith.constant 0 : index
    %7 = vector.load %arg2[%6, %c0, %c0_2] : memref<10x16x32xbf16, #tpu.memory_space<vmem>>, vector<8x16x32xbf16>
    %8 = vector.shape_cast %7 : vector<8x16x32xbf16> to vector<128x32xbf16>
    %c0_3 = arith.constant 0 : index
    %c0_4 = arith.constant 0 : index
    %c0_5 = arith.constant 0 : index
    %9 = vector.load %arg3[%c0_3, %c0_4, %c0_5] : memref<3x32x128xbf16, #tpu.memory_space<vmem>>, vector<1x32x128xbf16>
    %10 = vector.shape_cast %9 : vector<1x32x128xbf16> to vector<32x128xbf16>
    %cst = arith.constant dense<0.000000e+00> : vector<128x128xf32>
    %11 = tpu.matmul %8, %10, %cst {dimension_numbers = #tpu.dot_dimension_numbers<[1], [0], [0], [1], [0, 0, 1, 1], [], []>} : vector<128x32xbf16>, vector<32x128xbf16>, vector<128x128xf32> -> vector<128x128xf32>
    %c1_i32 = arith.constant 1 : i32
    %12 = arith.addi %4, %c1_i32 : i32
    %13 = arith.index_cast %12 : i32 to index
    %c0_6 = arith.constant 0 : index
    %c0_7 = arith.constant 0 : index
    %14 = vector.load %arg2[%13, %c0_6, %c0_7] : memref<10x16x32xbf16, #tpu.memory_space<vmem>>, vector<8x16x32xbf16>
    %15 = vector.shape_cast %14 : vector<8x16x32xbf16> to vector<128x32xbf16>
    %c1 = arith.constant 1 : index
    %c0_8 = arith.constant 0 : index
    %c0_9 = arith.constant 0 : index
    %16 = vector.load %arg3[%c1, %c0_8, %c0_9] : memref<3x32x128xbf16, #tpu.memory_space<vmem>>, vector<1x32x128xbf16>
    %17 = vector.shape_cast %16 : vector<1x32x128xbf16> to vector<32x128xbf16>
    %cst_10 = arith.constant dense<0.000000e+00> : vector<128x128xf32>
    %18 = tpu.matmul %15, %17, %cst_10 {dimension_numbers = #tpu.dot_dimension_numbers<[1], [0], [0], [1], [0, 0, 1, 1], [], []>} : vector<128x32xbf16>, vector<32x128xbf16>, vector<128x128xf32> -> vector<128x128xf32>
    %19 = arith.addf %11, %18 : vector<128x128xf32>
    %c2_i32 = arith.constant 2 : i32
    %20 = arith.addi %4, %c2_i32 : i32
    %21 = arith.index_cast %20 : i32 to index
    %c0_11 = arith.constant 0 : index
    %c0_12 = arith.constant 0 : index
    %22 = vector.load %arg2[%21, %c0_11, %c0_12] : memref<10x16x32xbf16, #tpu.memory_space<vmem>>, vector<8x16x32xbf16>
    %23 = vector.shape_cast %22 : vector<8x16x32xbf16> to vector<128x32xbf16>
    %c2 = arith.constant 2 : index
    %c0_13 = arith.constant 0 : index
    %c0_14 = arith.constant 0 : index
    %24 = vector.load %arg3[%c2, %c0_13, %c0_14] : memref<3x32x128xbf16, #tpu.memory_space<vmem>>, vector<1x32x128xbf16>
    %25 = vector.shape_cast %24 : vector<1x32x128xbf16> to vector<32x128xbf16>
    %cst_15 = arith.constant dense<0.000000e+00> : vector<128x128xf32>
    %26 = tpu.matmul %23, %25, %cst_15 {dimension_numbers = #tpu.dot_dimension_numbers<[1], [0], [0], [1], [0, 0, 1, 1], [], []>} : vector<128x32xbf16>, vector<32x128xbf16>, vector<128x128xf32> -> vector<128x128xf32>
    %27 = arith.addf %19, %26 : vector<128x128xf32>
    %28 = vector.shape_cast %27 : vector<128x128xf32> to vector<8x16x128xf32>
    %c0_i32_16 = arith.constant 0 : i32
    %29 = arith.cmpi ne, %arg1, %c0_i32_16 : i32
    %30 = arith.extui %29 : i1 to i32
    %c0_i32_17 = arith.constant 0 : i32
    %31 = arith.cmpi ne, %30, %c0_i32_17 : i32
    scf.if %31 {
      %c0_22 = arith.constant 0 : index
      %c0_23 = arith.constant 0 : index
      %38 = vector.load %arg8[%c0_22, %c0_23] : memref<16x128xf32, #tpu.memory_space<vmem>>, vector<16x128xf32>
      %cst_24 = arith.constant dense<0xFF800000> : vector<16x128xf32>
      %39 = vector.multi_reduction <maximumf>, %28, %cst_24 [0] : vector<8x16x128xf32> to vector<16x128xf32>
      %40 = arith.maximumf %38, %39 : vector<16x128xf32>
      %c0_25 = arith.constant 0 : index
      %c0_26 = arith.constant 0 : index
      %41 = vector.load %arg8[%c0_25, %c0_26] : memref<16x128xf32, #tpu.memory_space<vmem>>, vector<16x128xf32>
      tpu.vector_store %arg8[%c0_25, %c0_26], %40 {strides = array<i32>} : memref<16x128xf32, #tpu.memory_space<vmem>>, vector<16x128xf32>,
    } else {
    }
    %c0_i32_18 = arith.constant 0 : i32
    %32 = arith.cmpi eq, %arg1, %c0_i32_18 : i32
    %33 = arith.extui %32 : i1 to i32
    %c0_i32_19 = arith.constant 0 : i32
    %34 = arith.cmpi ne, %33, %c0_i32_19 : i32
    scf.if %34 {
      %38 = tpu.iota {dimensions = array<i32: 0>} : vector<8x1x1xi32>
      %39 = vector.broadcast %4 : i32 to vector<8x1x1xi32>
      %40 = arith.addi %39, %38 : vector<8x1x1xi32>
      %c6_i32 = arith.constant 6 : i32
      %41 = vector.broadcast %c6_i32 : i32 to vector<8x1x1xi32>
      %42 = arith.cmpi slt, %40, %41 : vector<8x1x1xi32>
      %cst_22 = arith.constant 0xFF800000 : f32
      %43 = vector.shape_cast %42 : vector<8x1x1xi1> to vector<8x1x1xi1>
      %44 = vector.broadcast %43 : vector<8x1x1xi1> to vector<8x16x128xi1>
      %45 = vector.broadcast %cst_22 : f32 to vector<8x16x128xf32>
      %46 = arith.select %44, %28, %45 : vector<8x16x128xi1>, vector<8x16x128xf32>
      %c0_23 = arith.constant 0 : index
      %c0_24 = arith.constant 0 : index
      %47 = vector.load %arg8[%c0_23, %c0_24] : memref<16x128xf32, #tpu.memory_space<vmem>>, vector<16x128xf32>
      %cst_25 = arith.constant dense<0xFF800000> : vector<16x128xf32>
      %48 = vector.multi_reduction <maximumf>, %46, %cst_25 [0] : vector<8x16x128xf32> to vector<16x128xf32>
      %49 = arith.maximumf %47, %48 : vector<16x128xf32>
      %c0_26 = arith.constant 0 : index
      %c0_27 = arith.constant 0 : index
      %50 = vector.load %arg8[%c0_26, %c0_27] : memref<16x128xf32, #tpu.memory_space<vmem>>, vector<16x128xf32>
      tpu.vector_store %arg8[%c0_26, %c0_27], %49 {strides = array<i32>} : memref<16x128xf32, #tpu.memory_space<vmem>>, vector<16x128xf32>,
    } else {
    }
    %c0_i32_20 = arith.constant 0 : i32
    %35 = arith.cmpi eq, %arg1, %c0_i32_20 : i32
    %36 = arith.extui %35 : i1 to i32
    %c0_i32_21 = arith.constant 0 : i32
    %37 = arith.cmpi ne, %36, %c0_i32_21 : i32
    scf.if %37 {
      %c0_22 = arith.constant 0 : index
      %c0_23 = arith.constant 0 : index
      %38 = vector.load %arg8[%c0_22, %c0_23] : memref<16x128xf32, #tpu.memory_space<vmem>>, vector<16x128xf32>
      %c0_24 = arith.constant 0 : index
      %c0_25 = arith.constant 0 : index
      %39 = vector.load %arg4[%c0_24, %c0_25] : memref<1x128xf32, #tpu.memory_space<vmem>>, vector<1x128xf32>
      %40 = vector.broadcast %39 : vector<1x128xf32> to vector<16x128xf32>
      %41 = arith.addf %38, %40 : vector<16x128xf32>
      %cst_26 = arith.constant 0.000000e+00 : f32
      %42 = vector.broadcast %cst_26 : f32 to vector<16x128xf32>
      %43 = arith.maximumf %41, %42 : vector<16x128xf32>
      %44 = arith.truncf %43 : vector<16x128xf32> to vector<16x128xbf16>
      %c0_27 = arith.constant 0 : index
      %c0_28 = arith.constant 0 : index
      %45 = vector.load %arg5[%c0_27, %c0_28] : memref<128x128xbf16, #tpu.memory_space<vmem>>, vector<128x128xbf16>
      %cst_29 = arith.constant dense<0.000000e+00> : vector<16x128xf32>
      %46 = tpu.matmul %44, %45, %cst_29 {dimension_numbers = #tpu.dot_dimension_numbers<[1], [0], [0], [1], [0, 0, 1, 1], [], []>} : vector<16x128xbf16>, vector<128x128xbf16>, vector<16x128xf32> -> vector<16x128xf32>
      %c0_30 = arith.constant 0 : index
      %c0_31 = arith.constant 0 : index
      %47 = vector.load %arg6[%c0_30, %c0_31] : memref<1x128xf32, #tpu.memory_space<vmem>>, vector<1x128xf32>
      %48 = vector.broadcast %47 : vector<1x128xf32> to vector<16x128xf32>
      %49 = arith.addf %46, %48 : vector<16x128xf32>
      %c0_32 = arith.constant 0 : index
      %c0_33 = arith.constant 0 : index
      %50 = vector.load %arg7[%c0_32, %c0_33] : memref<16x128xf32, #tpu.memory_space<vmem>>, vector<16x128xf32>
      tpu.vector_store %arg7[%c0_32, %c0_33], %49 {strides = array<i32>} : memref<16x128xf32, #tpu.memory_space<vmem>>, vector<16x128xf32>,
    } else {
    }
    return
  }
  func.func @transform_0(%arg0: i32, %arg1: i32) -> (i32, i32, i32) {
    %c0_i32 = arith.constant 0 : i32
    %c0_i32_0 = arith.constant 0 : i32
    %c0_i32_1 = arith.constant 0 : i32
    return %c0_i32, %arg0, %c0_i32_0 : i32, i32, i32
  }
  func.func @transform_1(%arg0: i32, %arg1: i32) -> (i32, i32, i32) {
    %c0_i32 = arith.constant 0 : i32
    %c0_i32_0 = arith.constant 0 : i32
    %c0_i32_1 = arith.constant 0 : i32
    %c0_i32_2 = arith.constant 0 : i32
    return %c0_i32, %c0_i32_0, %c0_i32_1 : i32, i32, i32
  }
  func.func @transform_2(%arg0: i32, %arg1: i32) -> (i32, i32) {
    %c0_i32 = arith.constant 0 : i32
    %c0_i32_0 = arith.constant 0 : i32
    %c0_i32_1 = arith.constant 0 : i32
    return %c0_i32, %c0_i32_0 : i32, i32
  }
  func.func @transform_3(%arg0: i32, %arg1: i32) -> (i32, i32) {
    %c0_i32 = arith.constant 0 : i32
    %c0_i32_0 = arith.constant 0 : i32
    %c0_i32_1 = arith.constant 0 : i32
    return %c0_i32, %c0_i32_0 : i32, i32
  }
  func.func @transform_4(%arg0: i32, %arg1: i32) -> (i32, i32) {
    %c0_i32 = arith.constant 0 : i32
    %c0_i32_0 = arith.constant 0 : i32
    %c0_i32_1 = arith.constant 0 : i32
    return %c0_i32, %c0_i32_0 : i32, i32
  }
  func.func @transform_5(%arg0: i32, %arg1: i32) -> (i32, i32) {
    %c0_i32 = arith.constant 0 : i32
    %c0_i32_0 = arith.constant 0 : i32
    return %arg0, %c0_i32 : i32, i32
  }
}

</mosaic_0001>

<bundles_post_ra>
// kernel: tpu_custom_call.1
= control target key start
LH: loop header
LB: loop body
LE: loop exit
PB: predicated region body
PF: predicated region fallthrough
CT: control target
= control target key end

     0   :  { %10 = vsyncpa [#allocation4], 0  ;;  %s1177_s0 = inlined_call_operand.hbm [shape: bf16[10,16,32], index: 0, kind: input, shape index: {}]   ;;  %s1178_s1 = inlined_call_operand.hbm [shape: bf16[3,32,128], index: 1, kind: input, shape index: {}]   ;;  %s1179_s2 = inlined_call_operand.vmem [shape: f32[1,128], index: 2, kind: input, shape index: {}]   ;;  %s1180_s3 = inlined_call_operand.hbm [shape: bf16[128,128], index: 3, kind: input, shape index: {}]   ;;  %s1181_s4 = inlined_call_operand.vmem [shape: f32[1,128], index: 4, kind: input, shape index: {}]   ;;  %s1182_s5 = inlined_call_operand.hbm [shape: f32[16,128], index: 5, kind: output, shape index: {}]  }
   0x1   :  { %11 = vsyncpa [#allocation7], 0 }
   0x2   :  { %12 = vsyncpa [#allocation5], 0  ;;  %s30_s20 = sshll.u32 %s1178_s1, 4  ;;  %s1079_s21 = smov [#allocation6]   ;;  %s31_s20 = int_to_ptr.hbm [resolvable:$true] %s30_s20 }
   0x3   :  { %s32_s22 = sshll.u32 %s1079_s21, 4  ;;  %s17_s25 = sshll.u32 %s1177_s0, 4  ;;  %s33_s22 = int_to_ptr.vmem [resolvable:$true] %s32_s22  ;;  %s18_s25 = int_to_ptr.hbm [resolvable:$true] %s17_s25 }
   0x4   :  { %s1080_s26 = smov 64   ;;  %s1081_s27 = smov 4  }
   0x5   :  { %38 = dma.hbm_to_vmem [thread:$0]  %s31_s20, 768, %s33_s22, [#allocation7], %s1080_s26, %s1080_s26, %s1081_s27  }
   0x6   :  { %s1082_s28 = smov [#allocation3]   ;;  %s45_s7 = sshll.u32 %s1180_s3, 4  ;;  %s46_s7 = int_to_ptr.hbm [resolvable:$true] %s45_s7 }
   0x7   :  { %s19_s29 = sshll.u32 %s1082_s28, 4  ;;  %s1083_s1 = smov [#allocation8]   ;;  %s20_s29 = int_to_ptr.vmem [resolvable:$true] %s19_s29 }
   0x8   :  { %25 = dma.hbm_to_vmem [thread:$0]  %s18_s25, 1280, %s20_s29, [#allocation4], %s1080_s26, %s1080_s26, %s1081_s27  }
   0x9   :  { %s47_s8 = sshll.u32 %s1083_s1, 4  ;;  %s48_s8 = int_to_ptr.vmem [resolvable:$true] %s47_s8 }
   0xa   :  { %53 = dma.hbm_to_vmem [thread:$0]  %s46_s7, 1024, %s48_s8, [#allocation7], %s1080_s26, %s1080_s26, %s1081_s27  }
   0xb   :  { %1073 = dma.done.wait [#allocation4], 1280  }
   0xc   :  { %1074 = vsyncadd [#allocation4], 4294966016 }
   0xd   :  { %1075 = dma.done.wait [#allocation7], 1792  }
   0xe   :  { %1076 = vsyncadd [#allocation7], 4294965504  ;;  %v948_v0 = vld [vmem:[#allocation6 + $0x18] sm:$0xff]  ;;  %v938_v1 = vld [vmem:[#allocation6 + $0x8] sm:$0xff]  ;;  %vm176_vm0 = vcmask 261120   ;;  %s1084_s10 = smov [#allocation9]  }
   0xf   :  { %v958_v2 = vld [vmem:[#allocation6 + $0x28] sm:$0xff]  ;;  %207 = vmatpush.bf16.msra.mxu0 %v948_v0  ;;  %332 = vmatpush.bf16.msra.mxu1 %v938_v1  ;;  %v947_v3 = vld [vmem:[#allocation6 + $0x10] sm:$0xff]  ;;  %v937_v4 = vld [vmem:[#allocation6] sm:$0xff]  ;;  %s735_s11 = sshll.u32 %s1084_s10, 4  ;;  %s737_s14 = sshll.u32 %s1182_s5, 4  ;;  %s736_s11 = int_to_ptr.vmem [resolvable:$true] %s735_s11  ;;  %s738_s14 = int_to_ptr.hbm [resolvable:$true] %s737_s14 }
  0x10   :  { %482 = vmatpush.bf16.msra.mxu2 %v958_v2  ;;  %v957_v5 = vld [vmem:[#allocation6 + $0x20] sm:$0xff]  ;;  %v939_v6 = vld [vmem:[#allocation3 + $0x8] sm:$0xff]  ;;  %v929_v7 = vld [vmem:[#allocation3] sm:$0xff]  ;;  %s1085_s15 = smov 128   ;;  %s1086_s16 = smov 8  }
  0x11   :  { %v949_v8 = vld [vmem:[#allocation3 + $0x10] sm:$0xff]  ;;  %v930_v10 = vld [vmem:[#allocation3 + $0x8] sm:$0xff]  ;;  %v950_v11 = vld [vmem:[#allocation3 + $0x18] sm:$0xff] }
  0x12   :  { %v940_v9 = vld [vmem:[#allocation3 + $0x10] sm:$0xff]  ;;  %v941_v12 = vld [vmem:[#allocation3 + $0x18] sm:$0xff]  ;;  %v951_v14 = vld [vmem:[#allocation3 + $0x20] sm:$0xff] }
  0x13   :  { %208 = vmatpush.bf16.msra.mxu0 %v947_v3  ;;  %333 = vmatpush.bf16.msra.mxu1 %v937_v4  ;;  %v931_v13 = vld [vmem:[#allocation3 + $0x10] sm:$0xff]  ;;  %v942_v15 = vld [vmem:[#allocation3 + $0x20] sm:$0xff]  ;;  %v932_v16 = vld [vmem:[#allocation3 + $0x18] sm:$0xff] }
  0x14   :  { %483 = vmatpush.bf16.msra.mxu2 %v957_v5  ;;  %v952_v17 = vld [vmem:[#allocation3 + $0x28] sm:$0xff]  ;;  %v933_v19 = vld [vmem:[#allocation3 + $0x20] sm:$0xff]  ;;  %v953_v20 = vld [vmem:[#allocation3 + $0x30] sm:$0xff] }
  0x15   :  { %v943_v18 = vld [vmem:[#allocation3 + $0x28] sm:$0xff]  ;;  %v944_v21 = vld [vmem:[#allocation3 + $0x30] sm:$0xff]  ;;  %v954_v23 = vld [vmem:[#allocation3 + $0x38] sm:$0xff] }
  0x16   :  { %793 = vmatmul.msk.bf16.vlgmr.msra.gmra.mxu0 %vm176_vm0, %v939_v6  ;;  %841 = vmatmul.msk.bf16.vlgmr.msra.gmra.mxu1 %vm176_vm0, %v929_v7  ;;  %v934_v22 = vld [vmem:[#allocation3 + $0x28] sm:$0xff]  ;;  %v966_v47 = vld [vmem:[#allocation8 + $0x38] sm:$0xff]  ;;  %v965_v49 = vld [vmem:[#allocation8 + $0x30] sm:$0xff] }
  0x17   :  { %889 = vmatmul.msk.bf16.vlgmr.msra.gmra.mxu2 %vm176_vm0, %v949_v8  ;;  %715 = vmatpush.bf16.msra.mxu3 %v966_v47  ;;  %v964_v52 = vld [vmem:[#allocation8 + $0x28] sm:$0xff]  ;;  %v955_v53 = vld [vmem:[#allocation3 + $0x40] sm:$0xff]  ;;  %v962_v58 = vld [vmem:[#allocation8 + $0x18] sm:$0xff] }
  0x18   :  { %v963_v55 = vld [vmem:[#allocation8 + $0x20] sm:$0xff]  ;;  %v945_v59 = vld [vmem:[#allocation3 + $0x38] sm:$0xff]  ;;  %v935_v60 = vld [vmem:[#allocation3 + $0x30] sm:$0xff] }
  0x19   :  { %v961_v62 = vld [vmem:[#allocation8 + $0x10] sm:$0xff]  ;;  %v960_v1 = vld [vmem:[#allocation8 + $0x8] sm:$0xff]  ;;  %v959_v3 = vld [vmem:[#allocation8] sm:$0xff] }
  0x1a   :  { %v956_v2 = vld [vmem:[#allocation3 + $0x48] sm:$0xff]  ;;  %v946_v7 = vld [vmem:[#allocation3 + $0x40] sm:$0xff]  ;;  %v936_v8 = vld [vmem:[#allocation3 + $0x38] sm:$0xff] }
  0x1b   :  { %716 = vmatpush.bf16.msra.mxu3 %v965_v49 }
  0x1f   :  { %717 = vmatpush.bf16.msra.mxu3 %v964_v52 }
  0x23   :  { %718 = vmatpush.bf16.msra.mxu3 %v963_v55 }
  0x26   :  { %794 = vmatmul.msk.bf16.gmra.mxu0 %vm176_vm0, %v940_v9  ;;  %842 = vmatmul.msk.bf16.gmra.mxu1 %vm176_vm0, %v930_v10 }
  0x27   :  { %890 = vmatmul.msk.bf16.gmra.mxu2 %vm176_vm0, %v950_v11  ;;  %719 = vmatpush.bf16.msra.mxu3 %v962_v58 }
  0x2b   :  { %720 = vmatpush.bf16.msra.mxu3 %v961_v62  ;;  %v976_v62 = vld [vmem:[%s1181_s4] ss:$0 sm:$0xff] }
  0x2f   :  { %721 = vmatpush.bf16.msra.mxu3 %v960_v1 }
  0x33   :  { %722 = vmatpush.bf16.msra.mxu3 %v959_v3 }
  0x36   :  { %795 = vmatmul.msk.bf16.gmra.mxu0 %vm176_vm0, %v941_v12  ;;  %843 = vmatmul.msk.bf16.gmra.mxu1 %vm176_vm0, %v931_v13 }
  0x37   :  { %891 = vmatmul.msk.bf16.gmra.mxu2 %vm176_vm0, %v951_v14 }
  0x46   :  { %796 = vmatmul.msk.bf16.gmra.mxu0 %vm176_vm0, %v942_v15  ;;  %844 = vmatmul.msk.bf16.gmra.mxu1 %vm176_vm0, %v932_v16 }
  0x47   :  { %892 = vmatmul.msk.bf16.gmra.mxu2 %vm176_vm0, %v952_v17 }
  0x56   :  { %797 = vmatmul.msk.bf16.gmra.mxu0 %vm176_vm0, %v943_v18  ;;  %845 = vmatmul.msk.bf16.gmra.mxu1 %vm176_vm0, %v933_v19 }
  0x57   :  { %893 = vmatmul.msk.bf16.gmra.mxu2 %vm176_vm0, %v953_v20 }
  0x66   :  { %798 = vmatmul.msk.bf16.gmra.mxu0 %vm176_vm0, %v944_v21  ;;  %846 = vmatmul.msk.bf16.gmra.mxu1 %vm176_vm0, %v934_v22 }
  0x67   :  { %894 = vmatmul.msk.bf16.gmra.mxu2 %vm176_vm0, %v954_v23 }
  0x76   :  { %799 = vmatmul.msk.bf16.gmra.mxu0 %vm176_vm0, %v945_v59  ;;  %847 = vmatmul.msk.bf16.gmra.mxu1 %vm176_vm0, %v935_v60 }
  0x77   :  { %895 = vmatmul.msk.bf16.gmra.mxu2 %vm176_vm0, %v955_v53 }
  0x86   :  { %800 = vmatmul.msk.bf16.gmra.mxu0 %vm176_vm0, %v946_v7  ;;  %848 = vmatmul.msk.bf16.gmra.mxu1 %vm176_vm0, %v936_v8 }
  0x87   :  { %896 = vmatmul.msk.bf16.gmra.mxu2 %vm176_vm0, %v956_v2 }
  0x93   :  { %v210_v24 = vpop.f32.mrf.mxu0  ;;  %v335_v25 = vpop.f32.mrf.mxu1 }
  0x94   :  { %v336_v26 = vadd.f32 %v335_v25, %v210_v24 }
  0x9a   :  { %v485_v27 = vpop.f32.mrf.mxu2 }
  0x9b   :  { %v1144_v28 = vadd.f32 %v485_v27, %v336_v26  ;;  %v212_v29 = vpop.f32.mrf.mxu0  ;;  %v337_v30 = vpop.f32.mrf.mxu1 }
  0x9c   :  { %v338_v31 = vadd.f32 %v337_v30, %v212_v29 }
  0xa2   :  { %v487_v32 = vpop.f32.mrf.mxu2 }
  0xa3   :  { %v1146_v33 = vadd.f32 %v487_v32, %v338_v31  ;;  %v215_v34 = vpop.f32.mrf.mxu0  ;;  %v340_v35 = vpop.f32.mrf.mxu1 }
  0xa4   :  { %v341_v36 = vadd.f32 %v340_v35, %v215_v34 }
  0xaa   :  { %v490_v37 = vpop.f32.mrf.mxu2 }
  0xab   :  { %v1148_v38 = vadd.f32 %v490_v37, %v341_v36  ;;  %v1150_v39 = vpop.f32.mrf.mxu0  ;;  %v1152_v40 = vpop.f32.mrf.mxu1 }
  0xac   :  { %v343_v27 = vadd.f32 %v1152_v40, %v1150_v39 }
  0xb2   :  { %v1154_v41 = vpop.f32.mrf.mxu2 }
  0xb3   :  { %v220_v42 = vpop.f32.mrf.mxu0  ;;  %v345_v43 = vpop.f32.mrf.mxu1  ;;  %v528_v36 = vadd.f32 %v1154_v41, %v343_v27 }
  0xb4   :  { %v346_v10 = vadd.f32 %v345_v43, %v220_v42 }
  0xba   :  { %v495_v44 = vpop.f32.mrf.mxu2 }
  0xbb   :  { %v222_v45 = vpop.f32.mrf.mxu0  ;;  %v347_v46 = vpop.f32.mrf.mxu1  ;;  %v529_v15 = vadd.f32 %v495_v44, %v346_v10 }
  0xbc   :  { %v348_v23 = vadd.f32 %v347_v46, %v222_v45  ;;  %v975_v45 = vld [vmem:[%s1179_s2] ss:$0 sm:$0xff] }
  0xbd   :  { %v618_v20 = vmax.f32 %v1144_v28, %v529_v15 }
  0xc2   :  { %v497_v48 = vpop.f32.mrf.mxu2 }
  0xc3   :  { %v225_v50 = vpop.f32.mrf.mxu0  ;;  %v350_v51 = vpop.f32.mrf.mxu1  ;;  %v530_v31 = vadd.f32 %v497_v48, %v348_v23 }
  0xc4   :  { %v351_v11 = vadd.f32 %v350_v51, %v225_v50 }
  0xca   :  { %v500_v54 = vpop.f32.mrf.mxu2 }
  0xcb   :  { %v227_v56 = vpop.f32.mrf.mxu0  ;;  %v352_v57 = vpop.f32.mrf.mxu1  ;;  %v531_v16 = vadd.f32 %v500_v54, %v351_v11 }
  0xcc   :  { %v353_v24 = vadd.f32 %v352_v57, %v227_v56 }
  0xcd   :  { %v619_v21 = vmax.f32 %v1148_v38, %v531_v16  ;;  %v625_v38 = vmax.f32 %v1146_v33, %v530_v31 }
  0xd2   :  { %v502_v61 = vpop.f32.mrf.mxu2 }
  0xd3   :  { %v230_v63 = vpop.f32.mrf.mxu0  ;;  %v355_v0 = vpop.f32.mrf.mxu1  ;;  %v532_v32 = vadd.f32 %v502_v61, %v353_v24 }
  0xd4   :  { %v356_v14 = vadd.f32 %v355_v0, %v230_v63 }
  0xd5   :  { %v626_v43 = vmax.f32 %v528_v36, %v532_v32 }
  0xda   :  { %v505_v4 = vpop.f32.mrf.mxu2 }
  0xdb   :  { %v232_v5 = vpop.f32.mrf.mxu0  ;;  %v357_v6 = vpop.f32.mrf.mxu1  ;;  %v533_v18 = vadd.f32 %v505_v4, %v356_v14 }
  0xdc   :  { %v358_v34 = vadd.f32 %v357_v6, %v232_v5 }
  0xdd   :  { %v620_v25 = vmax.f32 %v618_v20, %v533_v18 }
  0xe2   :  { %v507_v9 = vpop.f32.mrf.mxu2 }
  0xe3   :  { %v235_v12 = vpop.f32.mrf.mxu0  ;;  %v360_v13 = vpop.f32.mrf.mxu1  ;;  %v534_v37 = vadd.f32 %v507_v9, %v358_v34 }
  0xe4   :  { %v361_v17 = vadd.f32 %v360_v13, %v235_v12 }
  0xe5   :  { %v627_v39 = vmax.f32 %v625_v38, %v534_v37 }
  0xea   :  { %v510_v19 = vpop.f32.mrf.mxu2 }
  0xeb   :  { %v535_v22 = vadd.f32 %v510_v19, %v361_v17  ;;  %v237_v29 = vpop.f32.mrf.mxu0  ;;  %v362_v30 = vpop.f32.mrf.mxu1 }
  0xec   :  { %v363_v28 = vadd.f32 %v362_v30, %v237_v29 }
  0xed   :  { %v621_v26 = vmax.f32 %v619_v21, %v535_v22 }
  0xef   :  { %v624_v35 = vmax.f32 %v620_v25, %v621_v26 }
  0xf1   :  { %v642_v47 = vadd.f32 %v975_v45, %v624_v35 }
  0xf2   :  { %v512_v42 = vpop.f32.mrf.mxu2 }
  0xf3   :  { %v536_v44 = vadd.f32 %v512_v42, %v363_v28  ;;  %v644_v49 = vmax.f32 %v642_v47, 0.0  ;;  %v240_v41 = vpop.f32.mrf.mxu0  ;;  %v365_v52 = vpop.f32.mrf.mxu1 }
  0xf5   :  { %v628_v40 = vmax.f32 %v626_v43, %v536_v44 }
  0xf7   :  { %v631_v46 = vmax.f32 %v627_v39, %v628_v40 }
  0xf9   :  { %v643_v48 = vadd.f32 %v975_v45, %v631_v46 }
  0xfa   :  { %v515_v53 = vpop.f32.mrf.mxu2 }
  0xfb   :  { %v645_v50 = vmax.f32 %v643_v48, 0.0  ;;  %v242_v54 = vpop.f32.mrf.mxu0  ;;  %v367_v33 = vpop.f32.mrf.mxu1 }
  0xfd   :  { %v646_v51 = vpack.c.bf16 %v645_v50, %v644_v49 }
  0xff   :  { %723 = vmatmul.bf16.vlgmr.msra.gmra.mxu3 %v646_v51 }
 0x102   :  { %v517_v55 = vpop.f32.mrf.mxu2 }
 0x103   :  { %v245_v56 = vpop.f32.mrf.mxu0  ;;  %v370_v57 = vpop.f32.mrf.mxu1 }
 0x10a   :  { %v520_v58 = vpop.f32.mrf.mxu2 }
 0x10b   :  { %v247_v59 = vpop.f32.mrf.mxu0  ;;  %v372_v60 = vpop.f32.mrf.mxu1 }
 0x112   :  { %v522_v61 = vpop.f32.mrf.mxu2 }
 0x182   :  { %v724_v63 = vpop.f32.mrf.mxu3 }
 0x183   :  { %v725_v0 = vadd.f32 %v976_v62, %v724_v63 }
 0x185   :  { %729 = vst [vmem:[#allocation9] sm:$0xff] %v725_v0 }
 0x18a   :  { %v726_v1 = vpop.f32.mrf.mxu3 }
 0x18b   :  { %v727_v2 = vadd.f32 %v976_v62, %v726_v1 }
 0x18d   :  { %730 = vst [vmem:[#allocation9 + $0x8] sm:$0xff] %v727_v2 }
 0x18e   :  { %743 = dma.vmem_to_hbm [thread:$0]  %s736_s11, 256, %s738_s14, [#allocation5], %s1085_s15, %s1085_s15, %s1086_s16  }
 0x18f   :  { %1077 = dma.done.wait [#allocation5], 256  }
 0x190   :  { %1078 = vsyncadd [#allocation5], 4294967040 }
 0x191   :  { %748 = vsyncpa [#allocation4], 1 }
 0x192   :  { %749 = vsyncpa [#allocation7], 1 }
 0x193   :  { %750 = vsyncpa [#allocation5], 1 }

</bundles_post_ra>
